<compile_context>
chip_gen: v7x
topology: tpu7x:2x2x1
jax: 0.10.0
libtpu: 0.0.40
codegen_flags: <defaults>
</compile_context>

<pallas_src>
import jax
import jax.numpy as jnp
from jax.experimental import pallas as pl
from jax.experimental.pallas import tpu as pltpu

# Model hyper-parameters (the PyTorch module's globals)
NUM_IN_FEATURE = 4
NUM_HIDDEN = 32
NUM_OUT_FEATURE = 2


def _lstm_ship_kernel(x_ref,       # [(T+1)*Bp, F] bf16, time-major; last Bp rows zero
                      w_big_ref,   # [3H + F, 8H]  bf16 packed weights
                      b_pack_ref,  # [2, 8H]       f32  packed biases
                      out_ref):    # [Bp, 4H]      f32  (cols [0, O) meaningful)
    TB1, F = x_ref.shape
    Bp, H4 = out_ref.shape
    H = H4 // 4
    H2, H6, H8 = 2 * H, 6 * H, 8 * H
    T = TB1 // Bp - 1

    # ---- Unpack inputs (each read once, off the serial chain) ---------------
    w_fused = w_big_ref[0:H2, :]                # [2H, 8H] bf16 fused recurrent weight
    wfc = w_big_ref[H2:3 * H, 0:H4]             # [H, 4H]  bf16 fc weight (padded cols)
    w_x = w_big_ref[3 * H:3 * H + F, :]         # [F, 8H]  bf16 layer-0 input proj
    b_full = b_pack_ref[0:1, :]                 # [1, 8H]  f32  interleaved LSTM biases
    bfc = b_pack_ref[1:2, 0:H4]                 # [1, 4H]  f32  fc bias (padded)

    # ---- Batched layer-0 input projection (one MXU matmul, off-chain) -------
    # Row block s holds (in interleaved gate layout) x_s @ W_ih0 + b0 in the
    # layer-0 lanes and b1 in the layer-1 lanes.
    gb_all = (jnp.dot(x_ref[...], w_x, preferred_element_type=jnp.float32)
              + b_full)                          # [(T+1)*Bp, 8H] f32

    def dual_cell(gates, c_cat):
        # One sigmoid over the full [Bp, 8H] gates; g recovered via
        # tanh(z) = 2*sigmoid(2z) - 1 (g columns pre-scaled by 2 host-side).
        s = jax.nn.sigmoid(gates)
        i = s[:, 0:H2]
        f = s[:, H2:H4]
        g = 2.0 * s[:, H4:H6] - 1.0
        o = s[:, H6:H8]
        c = f * c_cat + i * g
        h = o * jnp.tanh(c)
        return h, c          # [Bp, 2H] f32: lanes [0,H) = layer 0, [H,2H) = layer 1

    # ---- Wavefront super-step s = 0: layer-0 cell for t = 0 only ------------
    # h_prev = 0 for both layers -> the recurrent matmul is skipped entirely.
    h_cat, c_cat = dual_cell(gb_all[0:Bp, :], jnp.zeros((Bp, H2), jnp.float32))
    # Layer 1 has not run yet: zero its half of the state.
    lane = jax.lax.broadcasted_iota(jnp.int32, (Bp, H2), 1)
    l0_mask = (lane < H).astype(jnp.float32)
    h_cat = h_cat * l0_mask
    c_cat = c_cat * l0_mask

    # ---- Wavefront super-steps s = 1..T (static unroll, T small & fixed) ----
    # Super-step s runs the layer-0 cell at t = s (its result is unused at
    # s = T) and the layer-1 cell at t = s-1, sharing ONE fused recurrent
    # matmul [Bp, 2H] x [2H, 8H].
    for s in range(1, T + 1):
        rec = jnp.dot(h_cat.astype(jnp.bfloat16), w_fused,
                      preferred_element_type=jnp.float32)        # [Bp, 8H]
        h_cat, c_cat = dual_cell(rec + gb_all[s * Bp:(s + 1) * Bp, :], c_cat)

    # ---- Final Linear on h1 at t = T-1 (lane-dense [Bp, 4H] store) ----------
    h1 = h_cat[:, H:H2].astype(jnp.bfloat16)
    out_ref[...] = (jnp.dot(h1, wfc, preferred_element_type=jnp.float32)
                    + bfc)


def _build_packed_weights(params):
    """Build the two packed kernel inputs (bf16 weight slab, f32 bias slab).

    Gate-column layout (blocks of H, PyTorch gate order i, f, g, o):
        column block 2k   -> layer-0 gate k
        column block 2k+1 -> layer-1 gate k
    The g-gate (k == 2) columns/bias are pre-scaled by 2 so the kernel can use
    tanh(z) = 2*sigmoid(2z) - 1 with a single full-width sigmoid.
    """
    H, F, O = NUM_HIDDEN, NUM_IN_FEATURE, NUM_OUT_FEATURE
    H8 = 8 * H

    wih0 = params["w_ih_l0"].T                       # [F, 4H]
    whh0 = params["w_hh_l0"].T                       # [H, 4H]
    wih1 = params["w_ih_l1"].T                       # [H, 4H]
    whh1 = params["w_hh_l1"].T                       # [H, 4H]
    b0 = params["b_ih_l0"] + params["b_hh_l0"]       # [4H]
    b1 = params["b_ih_l1"] + params["b_hh_l1"]       # [4H]

    w_x = jnp.zeros((F, H8), jnp.float32)
    w_fused = jnp.zeros((2 * H, H8), jnp.float32)
    b_full = jnp.zeros((H8,), jnp.float32)
    for k in range(4):                               # gates i, f, g, o
        sc = 2.0 if k == 2 else 1.0                  # g-gate scaling for sigmoid trick
        src = slice(k * H, (k + 1) * H)
        l0 = slice((2 * k) * H, (2 * k + 1) * H)
        l1 = slice((2 * k + 1) * H, (2 * k + 2) * H)
        w_x = w_x.at[:, l0].set(sc * wih0[:, src])
        w_fused = w_fused.at[0:H, l0].set(sc * whh0[:, src])
        w_fused = w_fused.at[0:H, l1].set(sc * wih1[:, src])
        w_fused = w_fused.at[H:2 * H, l1].set(sc * whh1[:, src])
        b_full = b_full.at[l0].set(sc * b0[src])
        b_full = b_full.at[l1].set(sc * b1[src])

    # FC weight padded to a full 128-lane block -> unmasked (8,128) output tile.
    wfc = jnp.zeros((H, 4 * H), jnp.float32).at[:, 0:O].set(params["fc_w"].T)

    # Packed bf16 weight slab (one DMA):
    #   rows [0, 2H)      : w_fused
    #   rows [2H, 3H)     : wfc (cols [0, 4H))
    #   rows [3H, 3H + F) : w_x
    w_big = jnp.zeros((3 * H + F, H8), jnp.float32)
    w_big = w_big.at[0:2 * H, :].set(w_fused)
    w_big = w_big.at[2 * H:3 * H, 0:4 * H].set(wfc)
    w_big = w_big.at[3 * H:3 * H + F, :].set(w_x)
    w_big = w_big.astype(jnp.bfloat16)

    # Packed f32 bias slab (one DMA): row 0 = b_full, row 1 = fc bias (padded).
    b_pack = jnp.zeros((2, H8), jnp.float32)
    b_pack = b_pack.at[0, :].set(b_full)
    b_pack = b_pack.at[1, 0:O].set(params["fc_b"])
    return w_big, b_pack


def lstm_ship_forward(x, params):
    """x: [B, T, F] float32 (batch_first, like the PyTorch module). Eval mode."""
    B, T, F = x.shape
    H = NUM_HIDDEN
    O = NUM_OUT_FEATURE
    Bp = max(8, ((B + 7) // 8) * 8)     # pad batch to a sublane multiple

    # Time-major [(T+1)*Bp, F]: row s*Bp + b holds timestep s of (padded) batch
    # b.  One extra all-zero timestep lets the last wavefront super-step reuse
    # the same batched projection (its layer-0 half is never read).
    x_pad = jnp.zeros((T + 1, Bp, F), jnp.float32)
    x_pad = x_pad.at[:T, :B, :].set(jnp.transpose(x, (1, 0, 2)))
    x_tb = x_pad.reshape((T + 1) * Bp, F).astype(jnp.bfloat16)

    w_big, b_pack = _build_packed_weights(params)

    # Single-invocation kernel: total footprint < 100 KiB, so everything is
    # VMEM-resident with no grid / pipelining (optimal on v5e/v6e/v7x).
    vmem = pl.BlockSpec(memory_space=pltpu.MemorySpace.VMEM)
    out = pl.pallas_call(
        _lstm_ship_kernel,
        out_shape=jax.ShapeDtypeStruct((Bp, 4 * H), jnp.float32),
        in_specs=[vmem, vmem, vmem],
        out_specs=vmem,
    )(x_tb, w_big, b_pack)
    return out[:B, :O]


def init_params(key):
    """Deterministic params with PyTorch-LSTM-like uniform(-1/sqrt(H), 1/sqrt(H)) init."""
    H, F, O = NUM_HIDDEN, NUM_IN_FEATURE, NUM_OUT_FEATURE
    bound = 1.0 / jnp.sqrt(jnp.float32(H))
    keys = jax.random.split(key, 10)

    def u(k, shape):
        return jax.random.uniform(k, shape, jnp.float32, -bound, bound)

    return {
        "w_ih_l0": u(keys[0], (4 * H, F)),
        "w_hh_l0": u(keys[1], (4 * H, H)),
        "b_ih_l0": u(keys[2], (4 * H,)),
        "b_hh_l0": u(keys[3], (4 * H,)),
        "w_ih_l1": u(keys[4], (4 * H, H)),
        "w_hh_l1": u(keys[5], (4 * H, H)),
        "b_ih_l1": u(keys[6], (4 * H,)),
        "b_hh_l1": u(keys[7], (4 * H,)),
        "fc_w":    u(keys[8], (O, H)),
        "fc_b":    u(keys[9], (O,)),
    }


def _reference_forward(x, params):
    """Pure-JAX f32 reference (same math as the PyTorch module), correctness guard."""
    H = NUM_HIDDEN
    B, T, _ = x.shape

    def cell(x_t, h, c, wih, whh, b):
        gates = x_t @ wih.T + h @ whh.T + b
        i = jax.nn.sigmoid(gates[:, 0 * H:1 * H])
        f = jax.nn.sigmoid(gates[:, 1 * H:2 * H])
        g = jnp.tanh(gates[:, 2 * H:3 * H])
        o = jax.nn.sigmoid(gates[:, 3 * H:4 * H])
        c = f * c + i * g
        h = o * jnp.tanh(c)
        return h, c

    h0 = c0 = h1 = c1 = jnp.zeros((B, H), jnp.float32)
    b0 = params["b_ih_l0"] + params["b_hh_l0"]
    b1 = params["b_ih_l1"] + params["b_hh_l1"]
    for t in range(T):
        h0, c0 = cell(x[:, t, :], h0, c0, params["w_ih_l0"], params["w_hh_l0"], b0)
        h1, c1 = cell(h0, h1, c1, params["w_ih_l1"], params["w_hh_l1"], b1)
    return h1 @ params["fc_w"].T + params["fc_b"]


if __name__ == "__main__":
    key = jax.random.PRNGKey(0)
    k_x, k_p = jax.random.split(key)

    B, T = 2, 8
    x = jax.random.normal(k_x, (B, T, NUM_IN_FEATURE), jnp.float32)
    params = init_params(k_p)

    out = lstm_ship_forward(x, params)
    out = jax.block_until_ready(out)

    ref = _reference_forward(x, params)
    assert out.shape == (B, NUM_OUT_FEATURE)
    # Kernel uses bf16 matmul operands (f32 accumulation/state); tolerance is
    # looser than a pure-f32 comparison but tight for bounded LSTM activations.
    assert jnp.allclose(out, ref, atol=5e-2, rtol=5e-2)

    print("KERNEL_OK")
</pallas_src>

<mosaic_0001>
module attributes {stable_mosaic.version = 11 : i64} {
  func.func @_lstm_ship_kernel(%arg0: memref<72x4xbf16, #tpu.memory_space<vmem>>, %arg1: memref<100x256xbf16, #tpu.memory_space<vmem>>, %arg2: memref<2x256xf32, #tpu.memory_space<vmem>>, %arg3: memref<8x128xf32, #tpu.memory_space<vmem>>) attributes {dimension_semantics = [], scalar_prefetch = 0 : i64, scratch_operands = 0 : i64, tpu.core_type = #tpu.core_type<tc>} {
    %c0 = arith.constant 0 : index
    %c0_0 = arith.constant 0 : index
    %0 = vector.load %arg1[%c0, %c0_0] : memref<100x256xbf16, #tpu.memory_space<vmem>>, vector<64x256xbf16>
    %c64 = arith.constant 64 : index
    %c0_1 = arith.constant 0 : index
    %1 = vector.load %arg1[%c64, %c0_1] : memref<100x256xbf16, #tpu.memory_space<vmem>>, vector<32x128xbf16>
    %c96 = arith.constant 96 : index
    %c0_2 = arith.constant 0 : index
    %2 = vector.load %arg1[%c96, %c0_2] : memref<100x256xbf16, #tpu.memory_space<vmem>>, vector<4x256xbf16>
    %c0_3 = arith.constant 0 : index
    %c0_4 = arith.constant 0 : index
    %3 = vector.load %arg2[%c0_3, %c0_4] : memref<2x256xf32, #tpu.memory_space<vmem>>, vector<1x256xf32>
    %c1 = arith.constant 1 : index
    %c0_5 = arith.constant 0 : index
    %4 = vector.load %arg2[%c1, %c0_5] : memref<2x256xf32, #tpu.memory_space<vmem>>, vector<1x128xf32>
    %c0_6 = arith.constant 0 : index
    %c0_7 = arith.constant 0 : index
    %5 = vector.load %arg0[%c0_6, %c0_7] : memref<72x4xbf16, #tpu.memory_space<vmem>>, vector<72x4xbf16>
    %cst = arith.constant dense<0.000000e+00> : vector<72x256xf32>
    %6 = tpu.matmul %5, %2, %cst {dimension_numbers = #tpu.dot_dimension_numbers<[1], [0], [0], [1], [0, 0, 1, 1], [], []>} : vector<72x4xbf16>, vector<4x256xbf16>, vector<72x256xf32> -> vector<72x256xf32>
    %7 = vector.broadcast %3 : vector<1x256xf32> to vector<72x256xf32>
    %8 = arith.addf %6, %7 : vector<72x256xf32>
    %9 = vector.extract_strided_slice %8 {offsets = [0, 0], sizes = [8, 256], strides = [1, 1]} : vector<72x256xf32> to vector<8x256xf32>
    %cst_8 = arith.constant 0.000000e+00 : f32
    %10 = vector.broadcast %cst_8 : f32 to vector<8x64xf32>
    %11 = arith.negf %9 : vector<8x256xf32>
    %12 = math.exp %11 : vector<8x256xf32>
    %cst_9 = arith.constant 1.000000e+00 : f32
    %13 = vector.broadcast %cst_9 : f32 to vector<8x256xf32>
    %14 = arith.addf %13, %12 : vector<8x256xf32>
    %15 = arith.divf %13, %14 : vector<8x256xf32>
    %16 = vector.extract_strided_slice %15 {offsets = [0, 0], sizes = [8, 64], strides = [1, 1]} : vector<8x256xf32> to vector<8x64xf32>
    %17 = vector.extract_strided_slice %15 {offsets = [0, 64], sizes = [8, 64], strides = [1, 1]} : vector<8x256xf32> to vector<8x64xf32>
    %18 = vector.extract_strided_slice %15 {offsets = [0, 128], sizes = [8, 64], strides = [1, 1]} : vector<8x256xf32> to vector<8x64xf32>
    %cst_10 = arith.constant 2.000000e+00 : f32
    %19 = vector.broadcast %cst_10 : f32 to vector<8x64xf32>
    %20 = arith.mulf %19, %18 : vector<8x64xf32>
    %cst_11 = arith.constant 1.000000e+00 : f32
    %21 = vector.broadcast %cst_11 : f32 to vector<8x64xf32>
    %22 = arith.subf %20, %21 : vector<8x64xf32>
    %23 = vector.extract_strided_slice %15 {offsets = [0, 192], sizes = [8, 64], strides = [1, 1]} : vector<8x256xf32> to vector<8x64xf32>
    %24 = arith.mulf %17, %10 : vector<8x64xf32>
    %25 = arith.mulf %16, %22 : vector<8x64xf32>
    %26 = arith.addf %24, %25 : vector<8x64xf32>
    %27 = math.tanh %26 : vector<8x64xf32>
    %28 = arith.mulf %23, %27 : vector<8x64xf32>
    %29 = tpu.iota {dimensions = array<i32: 1>} : vector<8x64xi32>
    %c32_i32 = arith.constant 32 : i32
    %30 = vector.broadcast %c32_i32 : i32 to vector<8x64xi32>
    %31 = arith.cmpi slt, %29, %30 : vector<8x64xi32>
    %32 = arith.extui %31 : vector<8x64xi1> to vector<8x64xi32>
    %33 = arith.sitofp %32 : vector<8x64xi32> to vector<8x64xf32>
    %34 = arith.mulf %28, %33 : vector<8x64xf32>
    %35 = arith.mulf %26, %33 : vector<8x64xf32>
    %36 = arith.truncf %34 : vector<8x64xf32> to vector<8x64xbf16>
    %cst_12 = arith.constant dense<0.000000e+00> : vector<8x256xf32>
    %37 = tpu.matmul %36, %0, %cst_12 {dimension_numbers = #tpu.dot_dimension_numbers<[1], [0], [0], [1], [0, 0, 1, 1], [], []>} : vector<8x64xbf16>, vector<64x256xbf16>, vector<8x256xf32> -> vector<8x256xf32>
    %38 = vector.extract_strided_slice %8 {offsets = [8, 0], sizes = [8, 256], strides = [1, 1]} : vector<72x256xf32> to vector<8x256xf32>
    %39 = arith.addf %37, %38 : vector<8x256xf32>
    %40 = arith.negf %39 : vector<8x256xf32>
    %41 = math.exp %40 : vector<8x256xf32>
    %cst_13 = arith.constant 1.000000e+00 : f32
    %42 = vector.broadcast %cst_13 : f32 to vector<8x256xf32>
    %43 = arith.addf %42, %41 : vector<8x256xf32>
    %44 = arith.divf %42, %43 : vector<8x256xf32>
    %45 = vector.extract_strided_slice %44 {offsets = [0, 0], sizes = [8, 64], strides = [1, 1]} : vector<8x256xf32> to vector<8x64xf32>
    %46 = vector.extract_strided_slice %44 {offsets = [0, 64], sizes = [8, 64], strides = [1, 1]} : vector<8x256xf32> to vector<8x64xf32>
    %47 = vector.extract_strided_slice %44 {offsets = [0, 128], sizes = [8, 64], strides = [1, 1]} : vector<8x256xf32> to vector<8x64xf32>
    %cst_14 = arith.constant 2.000000e+00 : f32
    %48 = vector.broadcast %cst_14 : f32 to vector<8x64xf32>
    %49 = arith.mulf %48, %47 : vector<8x64xf32>
    %cst_15 = arith.constant 1.000000e+00 : f32
    %50 = vector.broadcast %cst_15 : f32 to vector<8x64xf32>
    %51 = arith.subf %49, %50 : vector<8x64xf32>
    %52 = vector.extract_strided_slice %44 {offsets = [0, 192], sizes = [8, 64], strides = [1, 1]} : vector<8x256xf32> to vector<8x64xf32>
    %53 = arith.mulf %46, %35 : vector<8x64xf32>
    %54 = arith.mulf %45, %51 : vector<8x64xf32>
    %55 = arith.addf %53, %54 : vector<8x64xf32>
    %56 = math.tanh %55 : vector<8x64xf32>
    %57 = arith.mulf %52, %56 : vector<8x64xf32>
    %58 = arith.truncf %57 : vector<8x64xf32> to vector<8x64xbf16>
    %cst_16 = arith.constant dense<0.000000e+00> : vector<8x256xf32>
    %59 = tpu.matmul %58, %0, %cst_16 {dimension_numbers = #tpu.dot_dimension_numbers<[1], [0], [0], [1], [0, 0, 1, 1], [], []>} : vector<8x64xbf16>, vector<64x256xbf16>, vector<8x256xf32> -> vector<8x256xf32>
    %60 = vector.extract_strided_slice %8 {offsets = [16, 0], sizes = [8, 256], strides = [1, 1]} : vector<72x256xf32> to vector<8x256xf32>
    %61 = arith.addf %59, %60 : vector<8x256xf32>
    %62 = arith.negf %61 : vector<8x256xf32>
    %63 = math.exp %62 : vector<8x256xf32>
    %cst_17 = arith.constant 1.000000e+00 : f32
    %64 = vector.broadcast %cst_17 : f32 to vector<8x256xf32>
    %65 = arith.addf %64, %63 : vector<8x256xf32>
    %66 = arith.divf %64, %65 : vector<8x256xf32>
    %67 = vector.extract_strided_slice %66 {offsets = [0, 0], sizes = [8, 64], strides = [1, 1]} : vector<8x256xf32> to vector<8x64xf32>
    %68 = vector.extract_strided_slice %66 {offsets = [0, 64], sizes = [8, 64], strides = [1, 1]} : vector<8x256xf32> to vector<8x64xf32>
    %69 = vector.extract_strided_slice %66 {offsets = [0, 128], sizes = [8, 64], strides = [1, 1]} : vector<8x256xf32> to vector<8x64xf32>
    %cst_18 = arith.constant 2.000000e+00 : f32
    %70 = vector.broadcast %cst_18 : f32 to vector<8x64xf32>
    %71 = arith.mulf %70, %69 : vector<8x64xf32>
    %cst_19 = arith.constant 1.000000e+00 : f32
    %72 = vector.broadcast %cst_19 : f32 to vector<8x64xf32>
    %73 = arith.subf %71, %72 : vector<8x64xf32>
    %74 = vector.extract_strided_slice %66 {offsets = [0, 192], sizes = [8, 64], strides = [1, 1]} : vector<8x256xf32> to vector<8x64xf32>
    %75 = arith.mulf %68, %55 : vector<8x64xf32>
    %76 = arith.mulf %67, %73 : vector<8x64xf32>
    %77 = arith.addf %75, %76 : vector<8x64xf32>
    %78 = math.tanh %77 : vector<8x64xf32>
    %79 = arith.mulf %74, %78 : vector<8x64xf32>
    %80 = arith.truncf %79 : vector<8x64xf32> to vector<8x64xbf16>
    %cst_20 = arith.constant dense<0.000000e+00> : vector<8x256xf32>
    %81 = tpu.matmul %80, %0, %cst_20 {dimension_numbers = #tpu.dot_dimension_numbers<[1], [0], [0], [1], [0, 0, 1, 1], [], []>} : vector<8x64xbf16>, vector<64x256xbf16>, vector<8x256xf32> -> vector<8x256xf32>
    %82 = vector.extract_strided_slice %8 {offsets = [24, 0], sizes = [8, 256], strides = [1, 1]} : vector<72x256xf32> to vector<8x256xf32>
    %83 = arith.addf %81, %82 : vector<8x256xf32>
    %84 = arith.negf %83 : vector<8x256xf32>
    %85 = math.exp %84 : vector<8x256xf32>
    %cst_21 = arith.constant 1.000000e+00 : f32
    %86 = vector.broadcast %cst_21 : f32 to vector<8x256xf32>
    %87 = arith.addf %86, %85 : vector<8x256xf32>
    %88 = arith.divf %86, %87 : vector<8x256xf32>
    %89 = vector.extract_strided_slice %88 {offsets = [0, 0], sizes = [8, 64], strides = [1, 1]} : vector<8x256xf32> to vector<8x64xf32>
    %90 = vector.extract_strided_slice %88 {offsets = [0, 64], sizes = [8, 64], strides = [1, 1]} : vector<8x256xf32> to vector<8x64xf32>
    %91 = vector.extract_strided_slice %88 {offsets = [0, 128], sizes = [8, 64], strides = [1, 1]} : vector<8x256xf32> to vector<8x64xf32>
    %cst_22 = arith.constant 2.000000e+00 : f32
    %92 = vector.broadcast %cst_22 : f32 to vector<8x64xf32>
    %93 = arith.mulf %92, %91 : vector<8x64xf32>
    %cst_23 = arith.constant 1.000000e+00 : f32
    %94 = vector.broadcast %cst_23 : f32 to vector<8x64xf32>
    %95 = arith.subf %93, %94 : vector<8x64xf32>
    %96 = vector.extract_strided_slice %88 {offsets = [0, 192], sizes = [8, 64], strides = [1, 1]} : vector<8x256xf32> to vector<8x64xf32>
    %97 = arith.mulf %90, %77 : vector<8x64xf32>
    %98 = arith.mulf %89, %95 : vector<8x64xf32>
    %99 = arith.addf %97, %98 : vector<8x64xf32>
    %100 = math.tanh %99 : vector<8x64xf32>
    %101 = arith.mulf %96, %100 : vector<8x64xf32>
    %102 = arith.truncf %101 : vector<8x64xf32> to vector<8x64xbf16>
    %cst_24 = arith.constant dense<0.000000e+00> : vector<8x256xf32>
    %103 = tpu.matmul %102, %0, %cst_24 {dimension_numbers = #tpu.dot_dimension_numbers<[1], [0], [0], [1], [0, 0, 1, 1], [], []>} : vector<8x64xbf16>, vector<64x256xbf16>, vector<8x256xf32> -> vector<8x256xf32>
    %104 = vector.extract_strided_slice %8 {offsets = [32, 0], sizes = [8, 256], strides = [1, 1]} : vector<72x256xf32> to vector<8x256xf32>
    %105 = arith.addf %103, %104 : vector<8x256xf32>
    %106 = arith.negf %105 : vector<8x256xf32>
    %107 = math.exp %106 : vector<8x256xf32>
    %cst_25 = arith.constant 1.000000e+00 : f32
    %108 = vector.broadcast %cst_25 : f32 to vector<8x256xf32>
    %109 = arith.addf %108, %107 : vector<8x256xf32>
    %110 = arith.divf %108, %109 : vector<8x256xf32>
    %111 = vector.extract_strided_slice %110 {offsets = [0, 0], sizes = [8, 64], strides = [1, 1]} : vector<8x256xf32> to vector<8x64xf32>
    %112 = vector.extract_strided_slice %110 {offsets = [0, 64], sizes = [8, 64], strides = [1, 1]} : vector<8x256xf32> to vector<8x64xf32>
    %113 = vector.extract_strided_slice %110 {offsets = [0, 128], sizes = [8, 64], strides = [1, 1]} : vector<8x256xf32> to vector<8x64xf32>
    %cst_26 = arith.constant 2.000000e+00 : f32
    %114 = vector.broadcast %cst_26 : f32 to vector<8x64xf32>
    %115 = arith.mulf %114, %113 : vector<8x64xf32>
    %cst_27 = arith.constant 1.000000e+00 : f32
    %116 = vector.broadcast %cst_27 : f32 to vector<8x64xf32>
    %117 = arith.subf %115, %116 : vector<8x64xf32>
    %118 = vector.extract_strided_slice %110 {offsets = [0, 192], sizes = [8, 64], strides = [1, 1]} : vector<8x256xf32> to vector<8x64xf32>
    %119 = arith.mulf %112, %99 : vector<8x64xf32>
    %120 = arith.mulf %111, %117 : vector<8x64xf32>
    %121 = arith.addf %119, %120 : vector<8x64xf32>
    %122 = math.tanh %121 : vector<8x64xf32>
    %123 = arith.mulf %118, %122 : vector<8x64xf32>
    %124 = arith.truncf %123 : vector<8x64xf32> to vector<8x64xbf16>
    %cst_28 = arith.constant dense<0.000000e+00> : vector<8x256xf32>
    %125 = tpu.matmul %124, %0, %cst_28 {dimension_numbers = #tpu.dot_dimension_numbers<[1], [0], [0], [1], [0, 0, 1, 1], [], []>} : vector<8x64xbf16>, vector<64x256xbf16>, vector<8x256xf32> -> vector<8x256xf32>
    %126 = vector.extract_strided_slice %8 {offsets = [40, 0], sizes = [8, 256], strides = [1, 1]} : vector<72x256xf32> to vector<8x256xf32>
    %127 = arith.addf %125, %126 : vector<8x256xf32>
    %128 = arith.negf %127 : vector<8x256xf32>
    %129 = math.exp %128 : vector<8x256xf32>
    %cst_29 = arith.constant 1.000000e+00 : f32
    %130 = vector.broadcast %cst_29 : f32 to vector<8x256xf32>
    %131 = arith.addf %130, %129 : vector<8x256xf32>
    %132 = arith.divf %130, %131 : vector<8x256xf32>
    %133 = vector.extract_strided_slice %132 {offsets = [0, 0], sizes = [8, 64], strides = [1, 1]} : vector<8x256xf32> to vector<8x64xf32>
    %134 = vector.extract_strided_slice %132 {offsets = [0, 64], sizes = [8, 64], strides = [1, 1]} : vector<8x256xf32> to vector<8x64xf32>
    %135 = vector.extract_strided_slice %132 {offsets = [0, 128], sizes = [8, 64], strides = [1, 1]} : vector<8x256xf32> to vector<8x64xf32>
    %cst_30 = arith.constant 2.000000e+00 : f32
    %136 = vector.broadcast %cst_30 : f32 to vector<8x64xf32>
    %137 = arith.mulf %136, %135 : vector<8x64xf32>
    %cst_31 = arith.constant 1.000000e+00 : f32
    %138 = vector.broadcast %cst_31 : f32 to vector<8x64xf32>
    %139 = arith.subf %137, %138 : vector<8x64xf32>
    %140 = vector.extract_strided_slice %132 {offsets = [0, 192], sizes = [8, 64], strides = [1, 1]} : vector<8x256xf32> to vector<8x64xf32>
    %141 = arith.mulf %134, %121 : vector<8x64xf32>
    %142 = arith.mulf %133, %139 : vector<8x64xf32>
    %143 = arith.addf %141, %142 : vector<8x64xf32>
    %144 = math.tanh %143 : vector<8x64xf32>
    %145 = arith.mulf %140, %144 : vector<8x64xf32>
    %146 = arith.truncf %145 : vector<8x64xf32> to vector<8x64xbf16>
    %cst_32 = arith.constant dense<0.000000e+00> : vector<8x256xf32>
    %147 = tpu.matmul %146, %0, %cst_32 {dimension_numbers = #tpu.dot_dimension_numbers<[1], [0], [0], [1], [0, 0, 1, 1], [], []>} : vector<8x64xbf16>, vector<64x256xbf16>, vector<8x256xf32> -> vector<8x256xf32>
    %148 = vector.extract_strided_slice %8 {offsets = [48, 0], sizes = [8, 256], strides = [1, 1]} : vector<72x256xf32> to vector<8x256xf32>
    %149 = arith.addf %147, %148 : vector<8x256xf32>
    %150 = arith.negf %149 : vector<8x256xf32>
    %151 = math.exp %150 : vector<8x256xf32>
    %cst_33 = arith.constant 1.000000e+00 : f32
    %152 = vector.broadcast %cst_33 : f32 to vector<8x256xf32>
    %153 = arith.addf %152, %151 : vector<8x256xf32>
    %154 = arith.divf %152, %153 : vector<8x256xf32>
    %155 = vector.extract_strided_slice %154 {offsets = [0, 0], sizes = [8, 64], strides = [1, 1]} : vector<8x256xf32> to vector<8x64xf32>
    %156 = vector.extract_strided_slice %154 {offsets = [0, 64], sizes = [8, 64], strides = [1, 1]} : vector<8x256xf32> to vector<8x64xf32>
    %157 = vector.extract_strided_slice %154 {offsets = [0, 128], sizes = [8, 64], strides = [1, 1]} : vector<8x256xf32> to vector<8x64xf32>
    %cst_34 = arith.constant 2.000000e+00 : f32
    %158 = vector.broadcast %cst_34 : f32 to vector<8x64xf32>
    %159 = arith.mulf %158, %157 : vector<8x64xf32>
    %cst_35 = arith.constant 1.000000e+00 : f32
    %160 = vector.broadcast %cst_35 : f32 to vector<8x64xf32>
    %161 = arith.subf %159, %160 : vector<8x64xf32>
    %162 = vector.extract_strided_slice %154 {offsets = [0, 192], sizes = [8, 64], strides = [1, 1]} : vector<8x256xf32> to vector<8x64xf32>
    %163 = arith.mulf %156, %143 : vector<8x64xf32>
    %164 = arith.mulf %155, %161 : vector<8x64xf32>
    %165 = arith.addf %163, %164 : vector<8x64xf32>
    %166 = math.tanh %165 : vector<8x64xf32>
    %167 = arith.mulf %162, %166 : vector<8x64xf32>
    %168 = arith.truncf %167 : vector<8x64xf32> to vector<8x64xbf16>
    %cst_36 = arith.constant dense<0.000000e+00> : vector<8x256xf32>
    %169 = tpu.matmul %168, %0, %cst_36 {dimension_numbers = #tpu.dot_dimension_numbers<[1], [0], [0], [1], [0, 0, 1, 1], [], []>} : vector<8x64xbf16>, vector<64x256xbf16>, vector<8x256xf32> -> vector<8x256xf32>
    %170 = vector.extract_strided_slice %8 {offsets = [56, 0], sizes = [8, 256], strides = [1, 1]} : vector<72x256xf32> to vector<8x256xf32>
    %171 = arith.addf %169, %170 : vector<8x256xf32>
    %172 = arith.negf %171 : vector<8x256xf32>
    %173 = math.exp %172 : vector<8x256xf32>
    %cst_37 = arith.constant 1.000000e+00 : f32
    %174 = vector.broadcast %cst_37 : f32 to vector<8x256xf32>
    %175 = arith.addf %174, %173 : vector<8x256xf32>
    %176 = arith.divf %174, %175 : vector<8x256xf32>
    %177 = vector.extract_strided_slice %176 {offsets = [0, 0], sizes = [8, 64], strides = [1, 1]} : vector<8x256xf32> to vector<8x64xf32>
    %178 = vector.extract_strided_slice %176 {offsets = [0, 64], sizes = [8, 64], strides = [1, 1]} : vector<8x256xf32> to vector<8x64xf32>
    %179 = vector.extract_strided_slice %176 {offsets = [0, 128], sizes = [8, 64], strides = [1, 1]} : vector<8x256xf32> to vector<8x64xf32>
    %cst_38 = arith.constant 2.000000e+00 : f32
    %180 = vector.broadcast %cst_38 : f32 to vector<8x64xf32>
    %181 = arith.mulf %180, %179 : vector<8x64xf32>
    %cst_39 = arith.constant 1.000000e+00 : f32
    %182 = vector.broadcast %cst_39 : f32 to vector<8x64xf32>
    %183 = arith.subf %181, %182 : vector<8x64xf32>
    %184 = vector.extract_strided_slice %176 {offsets = [0, 192], sizes = [8, 64], strides = [1, 1]} : vector<8x256xf32> to vector<8x64xf32>
    %185 = arith.mulf %178, %165 : vector<8x64xf32>
    %186 = arith.mulf %177, %183 : vector<8x64xf32>
    %187 = arith.addf %185, %186 : vector<8x64xf32>
    %188 = math.tanh %187 : vector<8x64xf32>
    %189 = arith.mulf %184, %188 : vector<8x64xf32>
    %190 = arith.truncf %189 : vector<8x64xf32> to vector<8x64xbf16>
    %cst_40 = arith.constant dense<0.000000e+00> : vector<8x256xf32>
    %191 = tpu.matmul %190, %0, %cst_40 {dimension_numbers = #tpu.dot_dimension_numbers<[1], [0], [0], [1], [0, 0, 1, 1], [], []>} : vector<8x64xbf16>, vector<64x256xbf16>, vector<8x256xf32> -> vector<8x256xf32>
    %192 = vector.extract_strided_slice %8 {offsets = [64, 0], sizes = [8, 256], strides = [1, 1]} : vector<72x256xf32> to vector<8x256xf32>
    %193 = arith.addf %191, %192 : vector<8x256xf32>
    %194 = arith.negf %193 : vector<8x256xf32>
    %195 = math.exp %194 : vector<8x256xf32>
    %cst_41 = arith.constant 1.000000e+00 : f32
    %196 = vector.broadcast %cst_41 : f32 to vector<8x256xf32>
    %197 = arith.addf %196, %195 : vector<8x256xf32>
    %198 = arith.divf %196, %197 : vector<8x256xf32>
    %199 = vector.extract_strided_slice %198 {offsets = [0, 0], sizes = [8, 64], strides = [1, 1]} : vector<8x256xf32> to vector<8x64xf32>
    %200 = vector.extract_strided_slice %198 {offsets = [0, 64], sizes = [8, 64], strides = [1, 1]} : vector<8x256xf32> to vector<8x64xf32>
    %201 = vector.extract_strided_slice %198 {offsets = [0, 128], sizes = [8, 64], strides = [1, 1]} : vector<8x256xf32> to vector<8x64xf32>
    %cst_42 = arith.constant 2.000000e+00 : f32
    %202 = vector.broadcast %cst_42 : f32 to vector<8x64xf32>
    %203 = arith.mulf %202, %201 : vector<8x64xf32>
    %cst_43 = arith.constant 1.000000e+00 : f32
    %204 = vector.broadcast %cst_43 : f32 to vector<8x64xf32>
    %205 = arith.subf %203, %204 : vector<8x64xf32>
    %206 = vector.extract_strided_slice %198 {offsets = [0, 192], sizes = [8, 64], strides = [1, 1]} : vector<8x256xf32> to vector<8x64xf32>
    %207 = arith.mulf %200, %187 : vector<8x64xf32>
    %208 = arith.mulf %199, %205 : vector<8x64xf32>
    %209 = arith.addf %207, %208 : vector<8x64xf32>
    %210 = math.tanh %209 : vector<8x64xf32>
    %211 = arith.mulf %206, %210 : vector<8x64xf32>
    %212 = vector.extract_strided_slice %211 {offsets = [0, 32], sizes = [8, 32], strides = [1, 1]} : vector<8x64xf32> to vector<8x32xf32>
    %213 = arith.truncf %212 : vector<8x32xf32> to vector<8x32xbf16>
    %cst_44 = arith.constant dense<0.000000e+00> : vector<8x128xf32>
    %214 = tpu.matmul %213, %1, %cst_44 {dimension_numbers = #tpu.dot_dimension_numbers<[1], [0], [0], [1], [0, 0, 1, 1], [], []>} : vector<8x32xbf16>, vector<32x128xbf16>, vector<8x128xf32> -> vector<8x128xf32>
    %215 = vector.broadcast %4 : vector<1x128xf32> to vector<8x128xf32>
    %216 = arith.addf %214, %215 : vector<8x128xf32>
    %c0_45 = arith.constant 0 : index
    %c0_46 = arith.constant 0 : index
    %217 = vector.load %arg3[%c0_45, %c0_46] : memref<8x128xf32, #tpu.memory_space<vmem>>, vector<8x128xf32>
    tpu.vector_store %arg3[%c0_45, %c0_46], %216 {strides = array<i32>} : memref<8x128xf32, #tpu.memory_space<vmem>>, vector<8x128xf32>,
    return
  }
}

</mosaic_0001>

<bundles_post_ra>
// kernel: tpu_custom_call.1
= control target key start
LH: loop header
LB: loop body
LE: loop exit
PB: predicated region body
PF: predicated region fallthrough
CT: control target
= control target key end

     0   :  { %8 = vsyncpa [#allocation3], 0  ;;  %s1426_s0 = inlined_call_operand.vmem [shape: bf16[72,4], index: 0, kind: input, shape index: {}]   ;;  %s1427_s1 = inlined_call_operand.hbm [shape: bf16[100,256], index: 1, kind: input, shape index: {}]   ;;  %s1428_s2 = inlined_call_operand.vmem [shape: f32[2,256], index: 2, kind: input, shape index: {}]   ;;  %s1429_s3 = inlined_call_operand.hbm [shape: f32[8,128], index: 3, kind: output, shape index: {}]  }
   0x1   :  { %9 = vsyncpa [#allocation4], 0  ;;  %s1166_s12 = smov [#allocation2]   ;;  %s1118_s16 = scalar_lea.hbm %s1427_s1, 1664 }
   0x2   :  { %s17_s13 = sshll.u32 %s1166_s12, 4  ;;  %p1119_p0 = scmp.ne.s32.totalorder %s1427_s1, %s1118_s16  ;;  %s18_s13 = int_to_ptr.vmem [resolvable:$true] %s17_s13 }
   0x3   :  { %p1122_p1 = scmp.lt.u32.totalorder %s1118_s16, %s1427_s1 }
   0x5   :  { %p1124_p2 = pnand %p1122_p1, %p1119_p0 }
   0x7   :  { %1127 = shalt.err (!%p1124_p2)
}
   0x8   :  { %s1128_s21 = scalar_lea.vmem %s18_s13, 1664  ;;  %p1133_p4 = scmp.lt.s32.totalorder %s18_s13, %s18_s13 }
   0x9   :  { %p1129_p3 = scmp.ne.s32.totalorder %s18_s13, %s1128_s21  ;;  %p1134_p5 = scmp.lt.s32.totalorder %s1128_s21, %s1128_s21 }
   0xb   :  { %p1135_p6 = por %p1134_p5, %p1133_p4 }
   0xd   :  { %p1136_p7 = pnand %p1135_p6, %p1129_p3 }
   0xf   :  { %1139 = shalt.err (!%p1136_p7)
}
  0x10   :  { %s1167_s22 = smov 128   ;;  %s1168_s23 = smov 8  }
  0x11   :  { %23 = dma.hbm_to_vmem [thread:$0]  %s1427_s1, 1664, %s18_s13, [#allocation3], %s1167_s22, %s1167_s22, %s1168_s23  }
  0x12   :  { %1162 = dma.done.wait [#allocation3], 1664  }
  0x13   :  { %1163 = vsyncadd [#allocation3], 4294965632  ;;  %v1169_v0 = vmov 0   ;;  %vm109_vm0 = vcmask 1041408   ;;  %v42_v1 = vld [vmem:[#allocation2 + $0x60] sm:$0x33]  ;;  %v55_v6 = vlaneseq }
  0x14   :  { %148 = vmatprep.mubr.bf16.mxu0 %v1169_v0  ;;  %178 = vmatprep.mubr.bf16.mxu1 %v1169_v0  ;;  %v926_v2 = vcombine.high %v42_v1, %v42_v1  ;;  %v925_v3 = vcombine.low %v42_v1, %v42_v1  ;;  %v1009_v4 = vld [vmem:[%s1426_s0] sm:$0xff]   ;;  %vm93_vm1 = vcmask 31744   ;;  %s1170_s29 = smov 64   ;;  %v1171_v31 = vmov 0.0   ;;  %v1010_v33 = vld [vmem:[%s1426_s0 + $0x18] sm:$0xff]   ;;  %s1174_s13 = smov [#allocation5]  }
  0x15   :  { %v56_v7 = vshrl.u32 %v55_v6, 7  ;;  %v43_v9 = vld [vmem:[%s1428_s2] ss:$2 sm:$0x3]  ;;  %v221_v27 = vand.u32 127, %v55_v6  ;;  %vm275_vm3 = vcmask 523264  }
  0x16   :  { %927 = vmatprep.subr.msk.bf16.mxu0 %vm109_vm0, %v926_v2  ;;  %v111_v5 = vsel %vm109_vm0, %v925_v3, 0  ;;  %992 = vmatprep.subr.msk.bf16.mxu1 %vm109_vm0, %v926_v2  ;;  %v1233_v34 = vld [vmem:[#allocation2 + $0x4] ss:$8 sps:$4 sm:$0xff]   ;;  %v1235_v35 = vld [vmem:[#allocation2] ss:$8 sps:$4 sm:$0xff]   ;;  %vm1172_vm4 = vmmov 0  }
  0x17   :  { %117 = vmatpush1.bf16.msra.mxu0 %v111_v5  ;;  %993 = vmatpush1.bf16.msra.mxu1 %v111_v5  ;;  %v57_v8 = vsub.s32 0, %v56_v7  ;;  %v61_v10 = vsub.s32 1, %v56_v7  ;;  %vm222_vm2 = vcmp.lt.s32.totalorder %v221_v27, 32  ;;  %v1237_v36 = vld [vmem:[#allocation2 + $0x14] ss:$8 sps:$4 sm:$0xff]   ;;  %vm860_vm5 = vcmask 261120  }
  0x18   :  { %v936_v32 = vsel %vm222_vm2, 1.0, %v1171_v31  ;;  %279 = vmatprep.subr.bf16.mxu1 %v1233_v34  ;;  %v1243_v37 = vld [vmem:[#allocation2 + $0x10] ss:$8 sps:$4 sm:$0xff]   ;;  %v1246_v38 = vld [vmem:[#allocation2 + $0x24] ss:$8 sps:$4 sm:$0xff]   ;;  %421 = vmatprep.subr.bf16.mxu0 %v1233_v34  ;;  %s911_s14 = sshll.u32 %s1174_s13, 4  ;;  %s912_s14 = int_to_ptr.vmem [resolvable:$true] %s911_s14 }
  0x19   :  { %v1217_v11 = vrot.slane %v43_v9, %v57_v8  ;;  %v1219_v12 = vrot.slane %v43_v9, %v61_v10  ;;  %v1017_v39 = vld [vmem:[%s1426_s0 + $0x20] ss:$0 sps:$4 sm:$0xff]   ;;  %v1255_v40 = vld [vmem:[#allocation2 + $0x20] ss:$8 sps:$4 sm:$0xff]   ;;  %v1258_v41 = vld [vmem:[#allocation2 + $0x34] ss:$8 sps:$4 sm:$0xff]   ;;  %p1145_p9 = scmp.lt.s32.totalorder %s912_s14, %s912_s14 }
  0x1a   :  { %928 = vmatmul.mubr.msk.bf16.vlgmr.msra.gmra.mrb[0].mxu0 %vm93_vm1, %v1009_v4  ;;  %931 = vmatmul.mubr.msk.bf16.vlgmr.msra.gmra.mrb[0].mxu1 %vm93_vm1, %v1010_v33  ;;  %v1264_v42 = vld [vmem:[#allocation2 + $0x30] ss:$8 sps:$4 sm:$0xff]   ;;  %s1140_s15 = scalar_lea.vmem %s912_s14, 128 }
  0x1b   :  { %158 = vmatprep.mubr.bf16.mxu0 %v1169_v0  ;;  %280 = vmatpush1.bf16.msra.mxu1 %v1235_v35  ;;  %p1141_p8 = scmp.ne.s32.totalorder %s912_s14, %s1140_s15  ;;  %p1146_p10 = scmp.lt.s32.totalorder %s1140_s15, %s1140_s15 }
  0x1c   :  { %188 = vmatprep.mubr.bf16.mxu1 %v1169_v0  ;;  %281 = vmatprep.subr.bf16.mxu1 %v1237_v36 }
  0x1d   :  { %422 = vmatpush1.bf16.msra.mxu0 %v1235_v35  ;;  %p1147_p11 = por %p1146_p10, %p1145_p9 }
  0x1e   :  { %423 = vmatprep.subr.bf16.mxu0 %v1237_v36 }
  0x1f   :  { %282 = vmatpush1.bf16.msra.mxu1 %v1243_v37  ;;  %p1148_p12 = pnand %p1147_p11, %p1141_p8 }
  0x20   :  { %283 = vmatprep.subr.bf16.mxu1 %v1246_v38 }
  0x21   :  { %424 = vmatpush1.bf16.msra.mxu0 %v1243_v37 }
  0x22   :  { %932 = vmatmul.mubr.msk.bf16.gmra.mrb[4].mxu1 %vm93_vm1, %v1017_v39  ;;  %425 = vmatprep.subr.bf16.mxu0 %v1246_v38 }
  0x23   :  { %284 = vmatpush1.bf16.msra.mxu1 %v1255_v40  ;;  %311 = vmatprep.mubr.bf16.mxu1 %v1169_v0 }
  0x24   :  { %285 = vmatprep.subr.bf16.mxu1 %v1258_v41 }
  0x25   :  { %426 = vmatpush1.bf16.msra.mxu0 %v1255_v40 }
  0x26   :  { %427 = vmatprep.subr.bf16.mxu0 %v1258_v41 }
  0x27   :  { %286 = vmatpush1.bf16.msra.mxu1 %v1264_v42 }
  0x28   :  { %350 = vmatprep.subr.bf16.mxu1 %v1233_v34 }
  0x29   :  { %428 = vmatpush1.bf16.msra.mxu0 %v1264_v42 }
  0x2a   :  { %563 = vmatprep.subr.bf16.mxu0 %v1233_v34 }
  0xed   :  { %v150_v13 = vpop.f32.mrb[0].mxu0  ;;  %v1275_v51 = vpop.f32.mrb[0].mxu1 }
  0xee   :  { %v151_v14 = vadd.f32 %v150_v13, %v1217_v11  ;;  %v152_v15 = vpop.f32.mrb[1].mxu0  ;;  %v1277_v52 = vpop.f32.mrb[1].mxu1 }
  0xef   :  { %v153_v16 = vadd.f32 %v152_v15, %v1219_v12  ;;  %v1223_v17 = vpop.f32.mrb[2].mxu0  ;;  %v1279_v53 = vpop.f32.mrb[2].mxu1 }
  0xf0   :  { %v933_v18 = vmul.f32 -1.442695, %v151_v14  ;;  %v1225_v19 = vpop.f32.mrb[3].mxu0  ;;  %v1281_v54 = vpop.f32.mrb[3].mxu1  ;;  %v155_v60 = vadd.f32 %v1223_v17, %v1217_v11 }
  0xf1   :  { %v934_v20 = vmul.f32 -1.442695, %v153_v16  ;;  %v157_v61 = vadd.f32 %v1225_v19, %v1219_v12 }
  0xf2   :  { %1028 = vpow2.f32 %v933_v18 }
  0xf3   :  { %1030 = vpow2.f32 %v934_v20  ;;  %v1024_v20 = vld [vmem:[%s1426_s0 + $0x8] sm:$0xff]  }
  0xf4   :  { %929 = vmatmul.mubr.msk.bf16.gmra.mrb[4].mxu0 %vm93_vm1, %v1024_v20 }
  0xf5   :  { %v1283_v55 = vpop.f32.mrb[4].mxu1  ;;  %168 = vmatprep.mubr.bf16.mxu0 %v1169_v0 }
  0xf6   :  { %v1285_v56 = vpop.f32.mrb[5].mxu1 }
  0xf7   :  { %v194_v57 = vpop.f32.mrb[6].mxu1 }
  0xf8   :  { %v195_v58 = vpop.f32.mrb[7].mxu1 }
  0xfc   :  { %v1029_v21 = vpop.eup %1028 }
  0xfd   :  { %v1031_v22 = vpop.eup %1030  ;;  %v203_v24 = vadd.f32 1.0, %v1029_v21 }
  0xfe   :  { %v204_v23 = vadd.f32 1.0, %v1031_v22 }
 0x100   :  { %1032 = vrcp.f32 %v204_v23 }
 0x101   :  { %1034 = vrcp.f32 %v203_v24 }
 0x10a   :  { %v1033_v25 = vpop.eup %1032 }
 0x10b   :  { %v209_v26 = vmul.f32 2.0, %v1033_v25  ;;  %v1035_v29 = vpop.eup %1034 }
 0x10c   :  { %v211_v43 = vmul.f32 0.0, %v1035_v29 }
 0x10d   :  { %v935_v28 = vadd.f32 -1.0, %v209_v26 }
 0x10f   :  { %v212_v30 = vmul.f32 %v1035_v29, %v935_v28 }
 0x111   :  { %214 = vrot.lane.b32.xlu0 %v212_v30, %s1170_s29 }
 0x115   :  { %226 = vrot.lane.b32.xlu0 %v936_v32, %s1170_s29 }
 0x183   :  { %v215_v44 = vpop.permute.xlu0 %214 }
 0x184   :  { %v217_v45 = vadd.f32 %v215_v44, %v211_v43 }
 0x186   :  { %1036 = vtanh.f32 %v217_v45 }
 0x187   :  { %v227_v48 = vpop.permute.xlu0 %226 }
 0x188   :  { %v230_v13 = vmul.f32 %v227_v48, %v217_v45 }
 0x190   :  { %v1037_v46 = vpop.eup %1036 }
 0x191   :  { %v219_v47 = vmul.f32 %v1037_v46, %v1033_v25 }
 0x193   :  { %v229_v49 = vmul.f32 %v227_v48, %v219_v47 }
 0x195   :  { %v231_v50 = vpack.c.bf16 %v229_v49, %v229_v49 }
 0x197   :  { %233 = vrot.lane.b32.xlu1 %v231_v50, %s1170_s29 }
 0x1c7   :  { %v160_v26 = vpop.f32.mrb[4].mxu0 }
 0x1c8   :  { %v162_v27 = vpop.f32.mrb[5].mxu0  ;;  %v161_v32 = vadd.f32 %v160_v26, %v1217_v11 }
 0x1c9   :  { %v1308_v28 = vpop.f32.mrb[6].mxu0  ;;  %v163_v33 = vadd.f32 %v162_v27, %v1219_v12 }
 0x1ca   :  { %v1310_v29 = vpop.f32.mrb[7].mxu0 }
 0x209   :  { %v234_v59 = vpop.permute.xlu1 %233 }
 0x20a   :  { %945 = vmatmul.mubr.msk.bf16.vlgmr.msra.gmra.mrb[8].mxu1 %vm275_vm3, %v234_v59 }
 0x20b   :  { %351 = vmatpush1.bf16.msra.mxu1 %v1235_v35  ;;  %382 = vmatprep.mubr.bf16.mxu1 %v1169_v0 }
 0x20c   :  { %352 = vmatprep.subr.bf16.mxu1 %v1237_v36 }
 0x20f   :  { %353 = vmatpush1.bf16.msra.mxu1 %v1243_v37 }
 0x210   :  { %354 = vmatprep.subr.bf16.mxu1 %v1246_v38 }
 0x213   :  { %355 = vmatpush1.bf16.msra.mxu1 %v1255_v40 }
 0x214   :  { %356 = vmatprep.subr.bf16.mxu1 %v1258_v41 }
 0x217   :  { %357 = vmatpush1.bf16.msra.mxu1 %v1264_v42 }
 0x218   :  { %492 = vmatprep.subr.bf16.mxu1 %v1233_v34 }
 0x2dd   :  { %v313_v62 = vpop.f32.mrb[8].mxu1 }
 0x2de   :  { %v314_v63 = vadd.f32 %v313_v62, %v155_v60  ;;  %v315_v1 = vpop.f32.mrb[9].mxu1 }
 0x2df   :  { %v316_v2 = vadd.f32 %v315_v1, %v157_v61  ;;  %v317_v3 = vpop.f32.mrb[10].mxu1 }
 0x2e0   :  { %v946_v4 = vmul.f32 -1.442695, %v314_v63  ;;  %v318_v5 = vpop.f32.mrb[11].mxu1 }
 0x2e1   :  { %v947_v6 = vmul.f32 -1.442695, %v316_v2  ;;  %v1025_v2 = vld [vmem:[%s1426_s0 + $0x10] sm:$0xff]   ;;  %s1173_s0 = smov 32  }
 0x2e2   :  { %1038 = vpow2.f32 %v946_v4  ;;  %930 = vmatmul.mubr.msk.bf16.gmra.mrb[8].mxu0 %vm93_vm1, %v1025_v2 }
 0x2e3   :  { %1040 = vpow2.f32 %v947_v6  ;;  %453 = vmatprep.mubr.bf16.mxu0 %v1169_v0 }
 0x2ec   :  { %v1039_v7 = vpop.eup %1038 }
 0x2ed   :  { %v1041_v8 = vpop.eup %1040  ;;  %v326_v9 = vadd.f32 1.0, %v1039_v7 }
 0x2ee   :  { %v327_v10 = vadd.f32 1.0, %v1041_v8 }
 0x2ef   :  { %1042 = vrcp.f32 %v326_v9 }
 0x2f0   :  { %1044 = vrcp.f32 %v327_v10 }
 0x2f9   :  { %v1043_v14 = vpop.eup %1042 }
 0x2fa   :  { %v1045_v15 = vpop.eup %1044  ;;  %v334_v16 = vmul.f32 %v1043_v14, %v230_v13 }
 0x2fb   :  { %v332_v17 = vmul.f32 2.0, %v1045_v15 }
 0x2fd   :  { %v948_v18 = vadd.f32 -1.0, %v332_v17  ;;  %v167_v17 = vadd.f32 %v1310_v29, %v1219_v12 }
 0x2ff   :  { %v335_v19 = vmul.f32 %v1043_v14, %v948_v18 }
 0x301   :  { %337 = vrot.lane.b32.xlu1 %v335_v19, %s1170_s29 }
 0x373   :  { %v338_v21 = vpop.permute.xlu1 %337 }
 0x374   :  { %v340_v22 = vadd.f32 %v338_v21, %v334_v16  ;;  %v165_v16 = vadd.f32 %v1308_v28, %v1217_v11 }
 0x376   :  { %1046 = vtanh.f32 %v340_v22 }
 0x380   :  { %v1047_v23 = vpop.eup %1046 }
 0x381   :  { %v342_v24 = vmul.f32 %v1047_v23, %v1045_v15 }
 0x383   :  { %v343_v25 = vpack.c.bf16 %v342_v24, %v342_v24 }
 0x385   :  { %345 = vrot.lane.b32.xlu0 %v343_v25, %s1170_s29 }
 0x3b5   :  { %v170_v9 = vpop.f32.mrb[8].mxu0 }
 0x3b6   :  { %v172_v10 = vpop.f32.mrb[9].mxu0 }
 0x3b7   :  { %v1331_v13 = vpop.f32.mrb[10].mxu0 }
 0x3b8   :  { %v1333_v14 = vpop.f32.mrb[11].mxu0 }
 0x3f7   :  { %v346_v30 = vpop.permute.xlu0 %345 }
 0x3f8   :  { %949 = vmatmul.mubr.msk.bf16.vlgmr.msra.gmra.mrb[12].mxu1 %vm275_vm3, %v346_v30 }
 0x3f9   :  { %493 = vmatpush1.bf16.msra.mxu1 %v1235_v35  ;;  %524 = vmatprep.mubr.bf16.mxu1 %v1169_v0 }
 0x3fa   :  { %494 = vmatprep.subr.bf16.mxu1 %v1237_v36 }
 0x3fd   :  { %495 = vmatpush1.bf16.msra.mxu1 %v1243_v37 }
 0x3fe   :  { %496 = vmatprep.subr.bf16.mxu1 %v1246_v38 }
 0x401   :  { %497 = vmatpush1.bf16.msra.mxu1 %v1255_v40 }
 0x402   :  { %498 = vmatprep.subr.bf16.mxu1 %v1258_v41 }
 0x405   :  { %499 = vmatpush1.bf16.msra.mxu1 %v1264_v42 }
 0x406   :  { %634 = vmatprep.subr.bf16.mxu1 %v1233_v34 }
 0x4cb   :  { %v384_v39 = vpop.f32.mrb[12].mxu1 }
 0x4cc   :  { %v385_v43 = vadd.f32 %v384_v39, %v161_v32  ;;  %v386_v44 = vpop.f32.mrb[13].mxu1 }
 0x4cd   :  { %v387_v45 = vadd.f32 %v386_v44, %v163_v33  ;;  %v388_v46 = vpop.f32.mrb[14].mxu1 }
 0x4ce   :  { %v950_v47 = vmul.f32 -1.442695, %v385_v43  ;;  %v389_v48 = vpop.f32.mrb[15].mxu1 }
 0x4cf   :  { %v951_v49 = vmul.f32 -1.442695, %v387_v45 }
 0x4d0   :  { %1048 = vpow2.f32 %v950_v47 }
 0x4d1   :  { %1050 = vpow2.f32 %v951_v49 }
 0x4da   :  { %v1049_v50 = vpop.eup %1048 }
 0x4db   :  { %v1051_v57 = vpop.eup %1050  ;;  %v397_v59 = vadd.f32 1.0, %v1049_v50 }
 0x4dc   :  { %v398_v58 = vadd.f32 1.0, %v1051_v57  ;;  %v171_v57 = vadd.f32 %v170_v9, %v1217_v11 }
 0x4de   :  { %1052 = vrcp.f32 %v398_v58  ;;  %v173_v58 = vadd.f32 %v172_v10, %v1219_v12 }
 0x4df   :  { %1054 = vrcp.f32 %v397_v59 }
 0x4e8   :  { %v1053_v60 = vpop.eup %1052 }
 0x4e9   :  { %v403_v61 = vmul.f32 2.0, %v1053_v60  ;;  %v1055_v63 = vpop.eup %1054 }
 0x4ea   :  { %v405_v3 = vmul.f32 %v1055_v63, %v340_v22 }
 0x4eb   :  { %v952_v62 = vadd.f32 -1.0, %v403_v61 }
 0x4ed   :  { %v406_v1 = vmul.f32 %v1055_v63, %v952_v62 }
 0x4ef   :  { %408 = vrot.lane.b32.xlu1 %v406_v1, %s1170_s29 }
 0x561   :  { %v409_v4 = vpop.permute.xlu1 %408 }
 0x562   :  { %v411_v5 = vadd.f32 %v409_v4, %v405_v3 }
 0x564   :  { %1056 = vtanh.f32 %v411_v5 }
 0x56e   :  { %v1057_v6 = vpop.eup %1056 }
 0x56f   :  { %v413_v7 = vmul.f32 %v1057_v6, %v1053_v60 }
 0x571   :  { %v414_v8 = vpack.c.bf16 %v413_v7, %v413_v7 }
 0x573   :  { %416 = vrot.lane.b32.xlu0 %v414_v8, %s1170_s29 }
 0x5e5   :  { %v417_v15 = vpop.permute.xlu0 %416 }
 0x5e6   :  { %953 = vmatmul.mubr.msk.bf16.vlgmr.msra.gmra.mrb[12].mxu0 %vm275_vm3, %v417_v15 }
 0x5e7   :  { %564 = vmatpush1.bf16.msra.mxu0 %v1235_v35  ;;  %595 = vmatprep.mubr.bf16.mxu0 %v1169_v0 }
 0x5e8   :  { %565 = vmatprep.subr.bf16.mxu0 %v1237_v36 }
 0x5eb   :  { %566 = vmatpush1.bf16.msra.mxu0 %v1243_v37 }
 0x5ec   :  { %567 = vmatprep.subr.bf16.mxu0 %v1246_v38 }
 0x5ef   :  { %568 = vmatpush1.bf16.msra.mxu0 %v1255_v40 }
 0x5f0   :  { %569 = vmatprep.subr.bf16.mxu0 %v1258_v41 }
 0x5f3   :  { %570 = vmatpush1.bf16.msra.mxu0 %v1264_v42 }
 0x5f4   :  { %705 = vmatprep.subr.bf16.mxu0 %v1233_v34 }
 0x6b9   :  { %v455_v18 = vpop.f32.mrb[12].mxu0 }
 0x6ba   :  { %v456_v19 = vadd.f32 %v455_v18, %v165_v16  ;;  %v457_v20 = vpop.f32.mrb[13].mxu0 }
 0x6bb   :  { %v458_v21 = vadd.f32 %v457_v20, %v167_v17  ;;  %v459_v22 = vpop.f32.mrb[14].mxu0 }
 0x6bc   :  { %v954_v23 = vmul.f32 -1.442695, %v456_v19  ;;  %v460_v24 = vpop.f32.mrb[15].mxu0 }
 0x6bd   :  { %v955_v25 = vmul.f32 -1.442695, %v458_v21  ;;  %v175_v24 = vadd.f32 %v1331_v13, %v1217_v11 }
 0x6be   :  { %1058 = vpow2.f32 %v954_v23 }
 0x6bf   :  { %1060 = vpow2.f32 %v955_v25  ;;  %v177_v25 = vadd.f32 %v1333_v14, %v1219_v12 }
 0x6c8   :  { %v1059_v26 = vpop.eup %1058 }
 0x6c9   :  { %v1061_v27 = vpop.eup %1060  ;;  %v468_v32 = vadd.f32 1.0, %v1059_v26 }
 0x6ca   :  { %v469_v30 = vadd.f32 1.0, %v1061_v27 }
 0x6cc   :  { %1062 = vrcp.f32 %v469_v30 }
 0x6cd   :  { %1064 = vrcp.f32 %v468_v32 }
 0x6d6   :  { %v1063_v28 = vpop.eup %1062 }
 0x6d7   :  { %v474_v33 = vmul.f32 2.0, %v1063_v28  ;;  %v1065_v29 = vpop.eup %1064 }
 0x6d8   :  { %v476_v44 = vmul.f32 %v1065_v29, %v411_v5 }
 0x6d9   :  { %v956_v39 = vadd.f32 -1.0, %v474_v33 }
 0x6db   :  { %v477_v43 = vmul.f32 %v1065_v29, %v956_v39 }
 0x6dd   :  { %479 = vrot.lane.b32.xlu1 %v477_v43, %s1170_s29 }
 0x74f   :  { %v480_v45 = vpop.permute.xlu1 %479 }
 0x750   :  { %v482_v46 = vadd.f32 %v480_v45, %v476_v44 }
 0x752   :  { %1066 = vtanh.f32 %v482_v46 }
 0x75c   :  { %v1067_v47 = vpop.eup %1066 }
 0x75d   :  { %v484_v48 = vmul.f32 %v1067_v47, %v1063_v28 }
 0x75f   :  { %v485_v49 = vpack.c.bf16 %v484_v48, %v484_v48 }
 0x761   :  { %487 = vrot.lane.b32.xlu0 %v485_v49, %s1170_s29 }
 0x7d3   :  { %v488_v50 = vpop.permute.xlu0 %487 }
 0x7d4   :  { %957 = vmatmul.mubr.msk.bf16.vlgmr.msra.gmra.mrb[16].mxu1 %vm275_vm3, %v488_v50 }
 0x7d5   :  { %635 = vmatpush1.bf16.msra.mxu1 %v1235_v35  ;;  %666 = vmatprep.mubr.bf16.mxu1 %v1169_v0 }
 0x7d6   :  { %636 = vmatprep.subr.bf16.mxu1 %v1237_v36 }
 0x7d9   :  { %637 = vmatpush1.bf16.msra.mxu1 %v1243_v37 }
 0x7da   :  { %638 = vmatprep.subr.bf16.mxu1 %v1246_v38 }
 0x7dd   :  { %639 = vmatpush1.bf16.msra.mxu1 %v1255_v40 }
 0x7de   :  { %640 = vmatprep.subr.bf16.mxu1 %v1258_v41 }
 0x7e1   :  { %641 = vmatpush1.bf16.msra.mxu1 %v1264_v42 }
 0x7e2   :  { %984 = vmatprep.subr.bf16.mxu1 %v1171_v31 }
 0x8a7   :  { %v526_v59 = vpop.f32.mrb[16].mxu1 }
 0x8a8   :  { %v527_v60 = vadd.f32 %v526_v59, %v171_v57  ;;  %v528_v61 = vpop.f32.mrb[17].mxu1 }
 0x8a9   :  { %v529_v62 = vadd.f32 %v528_v61, %v173_v58  ;;  %v530_v63 = vpop.f32.mrb[18].mxu1 }
 0x8aa   :  { %v958_v1 = vmul.f32 -1.442695, %v527_v60  ;;  %v531_v2 = vpop.f32.mrb[19].mxu1  ;;  %v183_v63 = vadd.f32 %v1277_v52, %v1219_v12 }
 0x8ab   :  { %v959_v3 = vmul.f32 -1.442695, %v529_v62  ;;  %v181_v62 = vadd.f32 %v1275_v51, %v1217_v11 }
 0x8ac   :  { %1068 = vpow2.f32 %v958_v1 }
 0x8ad   :  { %1070 = vpow2.f32 %v959_v3 }
 0x8b6   :  { %v1069_v4 = vpop.eup %1068 }
 0x8b7   :  { %v1071_v5 = vpop.eup %1070  ;;  %v539_v7 = vadd.f32 1.0, %v1069_v4 }
 0x8b8   :  { %v540_v6 = vadd.f32 1.0, %v1071_v5 }
 0x8ba   :  { %1072 = vrcp.f32 %v540_v6 }
 0x8bb   :  { %1074 = vrcp.f32 %v539_v7 }
 0x8c4   :  { %v1073_v8 = vpop.eup %1072 }
 0x8c5   :  { %v545_v9 = vmul.f32 2.0, %v1073_v8  ;;  %v1075_v10 = vpop.eup %1074 }
 0x8c6   :  { %v547_v17 = vmul.f32 %v1075_v10, %v482_v46 }
 0x8c7   :  { %v960_v15 = vadd.f32 -1.0, %v545_v9 }
 0x8c9   :  { %v548_v16 = vmul.f32 %v1075_v10, %v960_v15 }
 0x8cb   :  { %550 = vrot.lane.b32.xlu1 %v548_v16, %s1170_s29 }
 0x93d   :  { %v551_v18 = vpop.permute.xlu1 %550 }
 0x93e   :  { %v553_v19 = vadd.f32 %v551_v18, %v547_v17 }
 0x940   :  { %1076 = vtanh.f32 %v553_v19 }
 0x94a   :  { %v1077_v20 = vpop.eup %1076 }
 0x94b   :  { %v555_v21 = vmul.f32 %v1077_v20, %v1073_v8 }
 0x94d   :  { %v556_v22 = vpack.c.bf16 %v555_v21, %v555_v21 }
 0x94f   :  { %558 = vrot.lane.b32.xlu0 %v556_v22, %s1170_s29 }
 0x9c1   :  { %v559_v23 = vpop.permute.xlu0 %558 }
 0x9c2   :  { %961 = vmatmul.mubr.msk.bf16.vlgmr.msra.gmra.mrb[16].mxu0 %vm275_vm3, %v559_v23 }
 0x9c3   :  { %706 = vmatpush1.bf16.msra.mxu0 %v1235_v35  ;;  %737 = vmatprep.mubr.bf16.mxu0 %v1169_v0 }
 0x9c4   :  { %707 = vmatprep.subr.bf16.mxu0 %v1237_v36 }
 0x9c7   :  { %708 = vmatpush1.bf16.msra.mxu0 %v1243_v37 }
 0x9c8   :  { %709 = vmatprep.subr.bf16.mxu0 %v1246_v38 }
 0x9cb   :  { %710 = vmatpush1.bf16.msra.mxu0 %v1255_v40 }
 0x9cc   :  { %711 = vmatprep.subr.bf16.mxu0 %v1258_v41 }
 0x9cf   :  { %712 = vmatpush1.bf16.msra.mxu0 %v1264_v42 }
 0x9d0   :  { %776 = vmatprep.subr.bf16.mxu0 %v1233_v34 }
 0xa95   :  { %v597_v26 = vpop.f32.mrb[16].mxu0 }
 0xa96   :  { %v598_v27 = vadd.f32 %v597_v26, %v175_v24  ;;  %v599_v30 = vpop.f32.mrb[17].mxu0 }
 0xa97   :  { %v600_v32 = vadd.f32 %v599_v30, %v177_v25  ;;  %v601_v28 = vpop.f32.mrb[18].mxu0 }
 0xa98   :  { %v962_v33 = vmul.f32 -1.442695, %v598_v27  ;;  %v602_v39 = vpop.f32.mrb[19].mxu0  ;;  %v185_v27 = vadd.f32 %v1279_v53, %v1217_v11 }
 0xa99   :  { %v963_v29 = vmul.f32 -1.442695, %v600_v32 }
 0xa9a   :  { %1078 = vpow2.f32 %v962_v33 }
 0xa9b   :  { %1080 = vpow2.f32 %v963_v29 }
 0xaa4   :  { %v1079_v43 = vpop.eup %1078 }
 0xaa5   :  { %v1081_v44 = vpop.eup %1080  ;;  %v610_v34 = vadd.f32 1.0, %v1079_v43 }
 0xaa6   :  { %v611_v45 = vadd.f32 1.0, %v1081_v44 }
 0xaa8   :  { %1082 = vrcp.f32 %v611_v45 }
 0xaa9   :  { %1084 = vrcp.f32 %v610_v34 }
 0xab2   :  { %v1083_v13 = vpop.eup %1082 }
 0xab3   :  { %v616_v46 = vmul.f32 2.0, %v1083_v13  ;;  %v1085_v14 = vpop.eup %1084 }
 0xab4   :  { %v618_v49 = vmul.f32 %v1085_v14, %v553_v19 }
 0xab5   :  { %v964_v47 = vadd.f32 -1.0, %v616_v46 }
 0xab7   :  { %v619_v48 = vmul.f32 %v1085_v14, %v964_v47 }
 0xab9   :  { %621 = vrot.lane.b32.xlu1 %v619_v48, %s1170_s29 }
 0xb2b   :  { %v622_v50 = vpop.permute.xlu1 %621 }
 0xb2c   :  { %v624_v57 = vadd.f32 %v622_v50, %v618_v49  ;;  %v191_v49 = vadd.f32 %v1283_v55, %v1217_v11  ;;  %v193_v50 = vadd.f32 %v1285_v56, %v1219_v12 }
 0xb2e   :  { %1086 = vtanh.f32 %v624_v57 }
 0xb38   :  { %v1087_v58 = vpop.eup %1086 }
 0xb39   :  { %v626_v59 = vmul.f32 %v1087_v58, %v1083_v13 }
 0xb3b   :  { %v627_v60 = vpack.c.bf16 %v626_v59, %v626_v59 }
 0xb3d   :  { %629 = vrot.lane.b32.xlu0 %v627_v60, %s1170_s29 }
 0xbaf   :  { %v630_v61 = vpop.permute.xlu0 %629 }
 0xbb0   :  { %965 = vmatmul.mubr.msk.bf16.vlgmr.msra.gmra.mrb[20].mxu1 %vm275_vm3, %v630_v61 }
 0xbb1   :  { %988 = vmatprep.mubr.msk.bf16.mxu1 %vm1172_vm4, %v1171_v31 }
 0xc83   :  { %v668_v1 = vpop.f32.mrb[20].mxu1 }
 0xc84   :  { %v669_v2 = vadd.f32 %v668_v1, %v181_v62  ;;  %v670_v3 = vpop.f32.mrb[21].mxu1 }
 0xc85   :  { %v671_v4 = vadd.f32 %v670_v3, %v183_v63  ;;  %v672_v5 = vpop.f32.mrb[22].mxu1 }
 0xc86   :  { %v966_v6 = vmul.f32 -1.442695, %v669_v2  ;;  %v673_v7 = vpop.f32.mrb[23].mxu1 }
 0xc87   :  { %v967_v8 = vmul.f32 -1.442695, %v671_v4  ;;  %v1026_v7 = vld [vmem:[#allocation2 + $0x40] ss:$8 sps:$4 sm:$0xff]  }
 0xc88   :  { %1088 = vpow2.f32 %v966_v6  ;;  %985 = vmatpush3.bf16.msra.mxu1 %v1026_v7 }
 0xc89   :  { %1090 = vpow2.f32 %v967_v8  ;;  %v1027_v8 = vld [vmem:[#allocation2 + $0x50] ss:$8 sps:$4 sm:$0xff]   ;;  %986 = vmatprep.subr.bf16.mxu1 %v1171_v31 }
 0xc8c   :  { %987 = vmatpush3.bf16.msra.mxu1 %v1027_v8 }
 0xc92   :  { %v1089_v9 = vpop.eup %1088 }
 0xc93   :  { %v1091_v15 = vpop.eup %1090  ;;  %v681_v16 = vadd.f32 1.0, %v1089_v9 }
 0xc94   :  { %v682_v10 = vadd.f32 1.0, %v1091_v15 }
 0xc96   :  { %1092 = vrcp.f32 %v682_v10 }
 0xc97   :  { %1094 = vrcp.f32 %v681_v16 }
 0xca0   :  { %v1093_v51 = vpop.eup %1092 }
 0xca1   :  { %v687_v17 = vmul.f32 2.0, %v1093_v51  ;;  %v1095_v52 = vpop.eup %1094 }
 0xca2   :  { %v689_v20 = vmul.f32 %v1095_v52, %v624_v57 }
 0xca3   :  { %v968_v18 = vadd.f32 -1.0, %v687_v17 }
 0xca5   :  { %v690_v19 = vmul.f32 %v1095_v52, %v968_v18  ;;  %v977_v52 = vld [vmem:[%s1428_s2 + $0x1] ss:$0 sm:$0xff] }
 0xca7   :  { %692 = vrot.lane.b32.xlu1 %v690_v19, %s1170_s29 }
 0xd19   :  { %v693_v21 = vpop.permute.xlu1 %692 }
 0xd1a   :  { %v695_v22 = vadd.f32 %v693_v21, %v689_v20 }
 0xd1c   :  { %1096 = vtanh.f32 %v695_v22 }
 0xd26   :  { %v1097_v23 = vpop.eup %1096 }
 0xd27   :  { %v697_v24 = vmul.f32 %v1097_v23, %v1093_v51 }
 0xd29   :  { %v698_v25 = vpack.c.bf16 %v697_v24, %v697_v24 }
 0xd2b   :  { %700 = vrot.lane.b32.xlu0 %v698_v25, %s1170_s29 }
 0xd9d   :  { %v701_v26 = vpop.permute.xlu0 %700 }
 0xd9e   :  { %969 = vmatmul.mubr.msk.bf16.vlgmr.msra.gmra.mrb[20].mxu0 %vm275_vm3, %v701_v26 }
 0xd9f   :  { %777 = vmatpush1.bf16.msra.mxu0 %v1235_v35  ;;  %808 = vmatprep.mubr.bf16.mxu0 %v1169_v0  ;;  %v187_v35 = vadd.f32 %v1281_v54, %v1219_v12 }
 0xda0   :  { %778 = vmatprep.subr.bf16.mxu0 %v1237_v36 }
 0xda3   :  { %779 = vmatpush1.bf16.msra.mxu0 %v1243_v37 }
 0xda4   :  { %780 = vmatprep.subr.bf16.mxu0 %v1246_v38 }
 0xda7   :  { %781 = vmatpush1.bf16.msra.mxu0 %v1255_v40 }
 0xda8   :  { %782 = vmatprep.subr.bf16.mxu0 %v1258_v41 }
 0xdab   :  { %783 = vmatpush1.bf16.msra.mxu0 %v1264_v42 }
 0xe71   :  { %v739_v30 = vpop.f32.mrb[20].mxu0 }
 0xe72   :  { %v740_v0 = vadd.f32 %v739_v30, %v185_v27  ;;  %v741_v32 = vpop.f32.mrb[21].mxu0 }
 0xe73   :  { %v742_v36 = vadd.f32 %v741_v32, %v187_v35  ;;  %v743_v28 = vpop.f32.mrb[22].mxu0 }
 0xe74   :  { %v970_v37 = vmul.f32 -1.442695, %v740_v0  ;;  %v744_v33 = vpop.f32.mrb[23].mxu0 }
 0xe75   :  { %v971_v38 = vmul.f32 -1.442695, %v742_v36 }
 0xe76   :  { %1098 = vpow2.f32 %v970_v37 }
 0xe77   :  { %1100 = vpow2.f32 %v971_v38 }
 0xe80   :  { %v1099_v40 = vpop.eup %1098 }
 0xe81   :  { %v1101_v41 = vpop.eup %1100  ;;  %v752_v42 = vadd.f32 1.0, %v1099_v40 }
 0xe82   :  { %v753_v39 = vadd.f32 1.0, %v1101_v41 }
 0xe84   :  { %1102 = vrcp.f32 %v753_v39 }
 0xe85   :  { %1104 = vrcp.f32 %v752_v42 }
 0xe8e   :  { %v1103_v53 = vpop.eup %1102 }
 0xe8f   :  { %v758_v29 = vmul.f32 2.0, %v1103_v53  ;;  %v1105_v54 = vpop.eup %1104 }
 0xe90   :  { %v760_v45 = vmul.f32 %v1105_v54, %v695_v22 }
 0xe91   :  { %v972_v43 = vadd.f32 -1.0, %v758_v29 }
 0xe93   :  { %v761_v44 = vmul.f32 %v1105_v54, %v972_v43 }
 0xe95   :  { %763 = vrot.lane.b32.xlu1 %v761_v44, %s1170_s29 }
 0xf07   :  { %v764_v34 = vpop.permute.xlu1 %763 }
 0xf08   :  { %v766_v13 = vadd.f32 %v764_v34, %v760_v45 }
 0xf0a   :  { %1106 = vtanh.f32 %v766_v13 }
 0xf14   :  { %v1107_v46 = vpop.eup %1106 }
 0xf15   :  { %v768_v47 = vmul.f32 %v1107_v46, %v1103_v53 }
 0xf17   :  { %v769_v14 = vpack.c.bf16 %v768_v47, %v768_v47 }
 0xf19   :  { %771 = vrot.lane.b32.xlu0 %v769_v14, %s1170_s29 }
 0xf8b   :  { %v772_v48 = vpop.permute.xlu0 %771 }
 0xf8c   :  { %973 = vmatmul.mubr.msk.bf16.vlgmr.msra.gmra.mrb[24].mxu0 %vm275_vm3, %v772_v48 }
0x105f   :  { %v810_v57 = vpop.f32.mrb[24].mxu0 }
0x1060   :  { %v811_v58 = vadd.f32 %v810_v57, %v191_v49  ;;  %v812_v59 = vpop.f32.mrb[25].mxu0 }
0x1061   :  { %v813_v60 = vadd.f32 %v812_v59, %v193_v50  ;;  %v814_v61 = vpop.f32.mrb[26].mxu0 }
0x1062   :  { %v974_v62 = vmul.f32 -1.442695, %v811_v58  ;;  %v815_v63 = vpop.f32.mrb[27].mxu0 }
0x1063   :  { %v975_v1 = vmul.f32 -1.442695, %v813_v60 }
0x1064   :  { %1108 = vpow2.f32 %v974_v62 }
0x1065   :  { %1110 = vpow2.f32 %v975_v1 }
0x106e   :  { %v1109_v2 = vpop.eup %1108 }
0x106f   :  { %v1111_v3 = vpop.eup %1110  ;;  %v823_v5 = vadd.f32 1.0, %v1109_v2 }
0x1070   :  { %v824_v4 = vadd.f32 1.0, %v1111_v3 }
0x1072   :  { %1112 = vrcp.f32 %v824_v4 }
0x1073   :  { %1114 = vrcp.f32 %v823_v5 }
0x107c   :  { %v1113_v11 = vpop.eup %1112 }
0x107d   :  { %v829_v55 = vmul.f32 2.0, %v1113_v11  ;;  %v1115_v12 = vpop.eup %1114 }
0x107e   :  { %v831_v9 = vmul.f32 %v1115_v12, %v766_v13 }
0x107f   :  { %v976_v6 = vadd.f32 -1.0, %v829_v55 }
0x1081   :  { %v832_v56 = vmul.f32 %v1115_v12, %v976_v6 }
0x1083   :  { %834 = vrot.lane.b32.xlu1 %v832_v56, %s1170_s29 }
0x10f5   :  { %v835_v15 = vpop.permute.xlu1 %834 }
0x10f6   :  { %v837_v10 = vadd.f32 %v835_v15, %v831_v9 }
0x10f8   :  { %1116 = vtanh.f32 %v837_v10 }
0x1102   :  { %v1117_v16 = vpop.eup %1116 }
0x1103   :  { %v839_v51 = vmul.f32 %v1117_v16, %v1113_v11 }
0x1105   :  { %v840_v17 = vpack.c.bf16 %v839_v51, %v839_v51 }
0x1107   :  { %846 = vrot.lane.b32.xlu0 %v840_v17, %s1173_s0 }
0x1179   :  { %v847_v18 = vpop.permute.xlu0 %846 }
0x117a   :  { %989 = vmatmul.mubr.msk.bf16.vlgmr.msra.gmra.mrb[24].mxu1 %vm860_vm5, %v847_v18 }
0x124d   :  { %v898_v31 = vpop.f32.mrb[24].mxu1 }
0x124e   :  { %v899_v19 = vadd.f32 %v977_v52, %v898_v31  ;;  %v990_v20 = vpop.f32.mrb[25].mxu1 }
0x124f   :  { %v901_v21 = vpop.f32.mrb[26].mxu1 }
0x1250   :  { %904 = vst [vmem:[#allocation5] sm:$0xff] %v899_v19  ;;  %v991_v22 = vpop.f32.mrb[27].mxu1 }
0x1251   :  { %1151 = shalt.err (!%p1148_p12)
}
0x1252   :  { %s1152_s2 = scalar_lea.hbm %s1429_s3, 128 }
0x1253   :  { %p1153_p13 = scmp.ne.s32.totalorder %s1429_s3, %s1152_s2  ;;  %p1156_p0 = scmp.lt.u32.totalorder %s1152_s2, %s1429_s3 }
0x1255   :  { %p1158_p1 = pnand %p1156_p0, %p1153_p13 }
0x1257   :  { %1161 = shalt.err (!%p1158_p1)
}
0x1258   :  { %914 = dma.vmem_to_hbm [thread:$0]  %s912_s14, 128, %s1429_s3, [#allocation4]  }
0x1259   :  { %1164 = dma.done.wait [#allocation4], 128  }
0x125a   :  { %1165 = vsyncadd [#allocation4], 4294967168 }
0x125b   :  { %918 = vsyncpa [#allocation3], 1 }
0x125c   :  { %919 = vsyncpa [#allocation4], 1 }

</bundles_post_ra>
